<compile_context>
chip_gen: v7x
topology: tpu7x:2x2x1
jax: 0.10.0
libtpu: 0.0.40
codegen_flags: <defaults>
</compile_context>

<pallas_src>
import math

import jax
import jax.numpy as jnp
from jax import lax
from jax.experimental import pallas as pl
from jax.experimental.pallas import tpu as pltpu


# ------------------------------ fused per-head kernel --------------------------------

def _mhsa_head_kernel(xq_ref, xk_ref, xv_ref, wq_ref, wk_ref, wv_ref, wo_ref,
                      pe_ref, o_ref, acc_ref):
    # One (batch b, head h) grid step.  Ref shapes (bf16 unless noted):
    #   xq (M, H), xk/xv (MK, H), wq/wk/wv (H, D), wo (D, H), pe (D, L),
    #   o (M, H) f32 output block (revisited across h), acc (M, H) f32 scratch.
    M, H = xq_ref.shape
    MK = xk_ref.shape[0]
    D = wq_ref.shape[1]
    L = pe_ref.shape[1]
    W = max(128, ((MK + 127) // 128) * 128)       # lane-aligned width for the strided roll
    inv_sqrt_d = 1.0 / math.sqrt(D)
    h = pl.program_id(1)
    cdt = xq_ref.dtype                            # bf16 compute dtype for MXU operands

    @pl.when(h == 0)
    def _():
        acc_ref[...] = jnp.zeros_like(acc_ref)

    # --- per-head projections (bf16 MXU operands, f32 accumulation) -------------------
    # 1/sqrt(D) is folded into q: it scales both q.k^T and q.pe, matching (.. + ..)/sqrt(D).
    q = jnp.dot(xq_ref[...], wq_ref[...], preferred_element_type=jnp.float32) * inv_sqrt_d
    k = jnp.dot(xk_ref[...], wk_ref[...], preferred_element_type=jnp.float32)
    v = jnp.dot(xv_ref[...], wv_ref[...], preferred_element_type=jnp.float32)
    qb, kb, vb = q.astype(cdt), k.astype(cdt), v.astype(cdt)

    # --- scores in absolute key coordinates (MXU): S[i, c] = q_i . k_c ----------------
    s = lax.dot_general(qb, kb, (((1,), (1,)), ((), ())),
                        preferred_element_type=jnp.float32)                     # (M, MK)
    # relative-position bias r[i, j] = q_i . pe[:, j]
    r = jnp.dot(qb, pe_ref[...], preferred_element_type=jnp.float32)            # (M, L)

    # --- skew r into absolute coords; band mask folded into the padding ---------------
    # Pad r to a 128-multiple width with -1e30, then rotate row i right by i (a single
    # strided XLU roll).  Afterwards column c of row i holds r[i, c-i] inside the band
    # (0 <= c-i < L) and -1e30 everywhere else (including the wrap-around region), so no
    # iota mask / where is needed, and every row keeps exactly L finite logits (no NaNs).
    r_pad = jnp.concatenate(
        [r, jnp.full((M, W - L), -1e30, jnp.float32)], axis=1)                  # (M, W)
    bias = pltpu.roll(r_pad, shift=0, axis=1, stride=1, stride_axis=0)          # (M, W)
    logits = s + bias[:, :MK]                                                   # (M, MK)

    # --- softmax in f32 (exp on EUP; approx reciprocal on the otherwise-idle EUP slot) -
    m_ = jnp.max(logits, axis=-1, keepdims=True)
    p = jnp.exp(logits - m_)
    attn = p * pl.reciprocal(jnp.sum(p, axis=-1, keepdims=True), approx=True)

    # --- PV and this head's slice of the output projection, accumulated ---------------
    out_h = jnp.dot(attn.astype(cdt), vb, preferred_element_type=jnp.float32)   # (M, D)
    acc_ref[...] += jnp.dot(out_h.astype(cdt), wo_ref[...],
                            preferred_element_type=jnp.float32)                 # (M, H)

    @pl.when(h == pl.num_programs(1) - 1)
    def _():
        o_ref[...] = acc_ref[...].astype(o_ref.dtype)


# ------------------------------ module wrapper ----------------------------------------

def multi_head_seq_attention(query, key, value, params, *, nheads, head_dim):
    B, M, H = query.shape
    MK = key.shape[1]
    K, D = nheads, head_dim
    key_pe = params["key_pe"].reshape(D, -1)         # (D, L) — parameter layout prep only
    L = key_pe.shape[-1]
    assert MK == M + L, "key/value must carry attn_lim positions of memory"
    assert M % 8 == 0, "query length must be sublane-aligned for the strided roll"

    cdt = jnp.bfloat16
    # Head-major weight layout prepared once wrapper-side (layout plumbing, not compute):
    # output-column block h of the (H, K*D) projection corresponds to head h.
    wq = jnp.transpose(params["wq"].reshape(H, K, D), (1, 0, 2)).astype(cdt)   # (K, H, D)
    wk = jnp.transpose(params["wk"].reshape(H, K, D), (1, 0, 2)).astype(cdt)
    wv = jnp.transpose(params["wv"].reshape(H, K, D), (1, 0, 2)).astype(cdt)
    wo = params["wo"].reshape(K, D, H).astype(cdt)                             # (K, D, H)
    pe = key_pe.astype(cdt)

    # TODO(synk): at realistic M/L add a query-tile grid axis (TQ~128-256) with a manual
    # VMEM ring buffer for the sliding (TQ+L) K/V window (P4 double-buffering) and set
    # pltpu.CompilerParams(vmem_limit_bytes=...) with headroom; unnecessary at demo shapes.
    out = pl.pallas_call(
        _mhsa_head_kernel,
        out_shape=jax.ShapeDtypeStruct((B, M, H), query.dtype),
        grid=(B, K),                                  # head axis last = reduction axis
        in_specs=[
            pl.BlockSpec((None, M, H), lambda b, h: (b, 0, 0)),
            pl.BlockSpec((None, MK, H), lambda b, h: (b, 0, 0)),
            pl.BlockSpec((None, MK, H), lambda b, h: (b, 0, 0)),
            pl.BlockSpec((None, H, D), lambda b, h: (h, 0, 0)),
            pl.BlockSpec((None, H, D), lambda b, h: (h, 0, 0)),
            pl.BlockSpec((None, H, D), lambda b, h: (h, 0, 0)),
            pl.BlockSpec((None, D, H), lambda b, h: (h, 0, 0)),
            pl.BlockSpec((D, L), lambda b, h: (0, 0)),
        ],
        out_specs=pl.BlockSpec((None, M, H), lambda b, h: (b, 0, 0)),
        scratch_shapes=[pltpu.VMEM((M, H), jnp.float32)],
        compiler_params=pltpu.CompilerParams(
            dimension_semantics=("parallel", "arbitrary")),
    )(query.astype(cdt), key.astype(cdt), value.astype(cdt),
      wq, wk, wv, wo, pe)

    # TODO(synk): AdaptiveSpan trimming/soft-masking and dropout are disabled in this
    # config (adapt_span=False, eval mode), so aux_loss is 0 and dropout is identity.
    aux_loss = jnp.float32(0.0)
    return out, aux_loss


# --------------------------- pure-JAX reference (f32, module semantics) ----------------

def _reference(query, key, value, params, *, nheads, head_dim):
    """Direct transcription of the PyTorch forward (skew/unskew pad-reshape trick)."""
    HIGH = jax.lax.Precision.HIGHEST
    B, M, H = query.shape
    MK = key.shape[1]
    key_pe = params["key_pe"]
    L = key_pe.shape[-1]
    D = head_dim

    def head_reshape(x, S):
        x = x.reshape(B, S, nheads, D)
        return jnp.transpose(x, (0, 2, 1, 3)).reshape(B * nheads, S, D)

    q = head_reshape(jnp.einsum("bsh,hk->bsk", query, params["wq"], precision=HIGH), M)
    k = head_reshape(jnp.einsum("bsh,hk->bsk", key, params["wk"], precision=HIGH), MK)
    v = head_reshape(jnp.einsum("bsh,hk->bsk", value, params["wv"], precision=HIGH), MK)

    BK = B * nheads
    s = jnp.einsum("bmd,bnd->bmn", q, k, precision=HIGH)              # (BK, M, MK)
    # unskew: (BK, M, M+L) -> (BK, M, L)
    s_flat = jnp.pad(s.reshape(BK, M * MK), ((0, 0), (0, M)))
    s_rel = s_flat.reshape(BK, M, MK + 1)[:, :, :L]
    attn = (s_rel + jnp.einsum("bmd,zdl->bml", q, key_pe, precision=HIGH)) / math.sqrt(D)
    attn = jax.nn.softmax(attn, axis=-1)
    # skew with pad value 0: (BK, M, L) -> (BK, M, L+M)
    a = jnp.pad(attn, ((0, 0), (0, 0), (0, M + 1)))
    a = a.reshape(BK, M * (L + M + 1))[:, :M * (L + M)].reshape(BK, M, L + M)
    out_h = jnp.einsum("bmn,bnd->bmd", a, v, precision=HIGH)

    out = out_h.reshape(B, nheads, M, D)
    out = jnp.transpose(out, (0, 2, 1, 3)).reshape(B, M, nheads * D)
    out = jnp.einsum("bmk,kh->bmh", out, params["wo"], precision=HIGH)
    return out


# ------------------------------------ main ---------------------------------------------

if __name__ == "__main__":
    # args: hid_sz=32, nheads=2, head_dim=16, attn_lim=16, adapt_span=False, dropout=0
    B, M, H = 2, 8, 32
    nheads, head_dim, attn_lim = 2, 16, 16
    KD = nheads * head_dim
    MK = M + attn_lim                     # key/value carry attn_lim positions of memory

    root = jax.random.PRNGKey(0)
    k_q, k_k, k_v, k_wq, k_wk, k_wv, k_wo, k_pe = jax.random.split(root, 8)

    query = jax.random.normal(k_q, (B, M, H), jnp.float32)
    key = jax.random.normal(k_k, (B, MK, H), jnp.float32)
    value = jax.random.normal(k_v, (B, MK, H), jnp.float32)

    params = {
        "wq": jax.random.normal(k_wq, (H, KD), jnp.float32) / math.sqrt(H),
        "wk": jax.random.normal(k_wk, (H, KD), jnp.float32) / math.sqrt(H),
        "wv": jax.random.normal(k_wv, (H, KD), jnp.float32) / math.sqrt(H),
        "wo": jax.random.normal(k_wo, (KD, H), jnp.float32) / math.sqrt(KD),
        "key_pe": jax.random.normal(k_pe, (1, head_dim, attn_lim), jnp.float32)
                  / math.sqrt(head_dim),
    }

    out, aux_loss = multi_head_seq_attention(query, key, value, params,
                                             nheads=nheads, head_dim=head_dim)
    out = jax.block_until_ready(out)

    ref = _reference(query, key, value, params, nheads=nheads, head_dim=head_dim)
    assert out.shape == (B, M, H)
    # Tolerance reflects bf16 MXU operands (inputs/weights/attn) + EUP approx reciprocal
    # in the kernel vs. an all-f32 HIGHEST-precision reference.
    assert jnp.allclose(out, ref, rtol=5e-2, atol=5e-2), \
        f"mismatch, max abs diff = {float(jnp.max(jnp.abs(out - ref)))}"

    print("KERNEL_OK")
</pallas_src>

<mosaic_0001>
module attributes {stable_mosaic.version = 11 : i64} {
  func.func @_mhsa_head_kernel(%arg0: i32, %arg1: i32, %arg2: memref<1x8x32xbf16, #tpu.memory_space<vmem>>, %arg3: memref<1x24x32xbf16, #tpu.memory_space<vmem>>, %arg4: memref<1x24x32xbf16, #tpu.memory_space<vmem>>, %arg5: memref<1x32x16xbf16, #tpu.memory_space<vmem>>, %arg6: memref<1x32x16xbf16, #tpu.memory_space<vmem>>, %arg7: memref<1x32x16xbf16, #tpu.memory_space<vmem>>, %arg8: memref<1x16x32xbf16, #tpu.memory_space<vmem>>, %arg9: memref<16x16xbf16, #tpu.memory_space<vmem>>, %arg10: memref<1x8x32xf32, #tpu.memory_space<vmem>>, %arg11: memref<8x32xf32, #tpu.memory_space<vmem>>) attributes {dimension_semantics = [#tpu.dimension_semantics<parallel>, #tpu.dimension_semantics<arbitrary>], iteration_bounds = array<i64: 2, 2>, scalar_prefetch = 0 : i64, scratch_operands = 1 : i64, tpu.core_type = #tpu.core_type<tc>, window_params = [{transform_indices = @transform_0, window_bounds = array<i64: 1, 8, 32>}, {transform_indices = @transform_1, window_bounds = array<i64: 1, 24, 32>}, {transform_indices = @transform_2, window_bounds = array<i64: 1, 24, 32>}, {transform_indices = @transform_3, window_bounds = array<i64: 1, 32, 16>}, {transform_indices = @transform_4, window_bounds = array<i64: 1, 32, 16>}, {transform_indices = @transform_5, window_bounds = array<i64: 1, 32, 16>}, {transform_indices = @transform_6, window_bounds = array<i64: 1, 16, 32>}, {pipeline_mode = #tpu.pipeline_mode<synchronous>, transform_indices = @transform_7, window_bounds = array<i64: 16, 16>}, {transform_indices = @transform_8, window_bounds = array<i64: 1, 8, 32>}]} {
    %c0_i32 = arith.constant 0 : i32
    %0 = arith.cmpi eq, %arg1, %c0_i32 : i32
    %1 = arith.extui %0 : i1 to i32
    %c0_i32_0 = arith.constant 0 : i32
    %2 = arith.cmpi ne, %1, %c0_i32_0 : i32
    scf.if %2 {
      %cst_39 = arith.constant 0.000000e+00 : f32
      %53 = vector.broadcast %cst_39 : f32 to vector<8x32xf32>
      %c0_40 = arith.constant 0 : index
      %c0_41 = arith.constant 0 : index
      %54 = vector.load %arg11[%c0_40, %c0_41] : memref<8x32xf32, #tpu.memory_space<vmem>>, vector<8x32xf32>
      tpu.vector_store %arg11[%c0_40, %c0_41], %53 {strides = array<i32>} : memref<8x32xf32, #tpu.memory_space<vmem>>, vector<8x32xf32>,
    } else {
    }
    %c0 = arith.constant 0 : index
    %c0_1 = arith.constant 0 : index
    %c0_2 = arith.constant 0 : index
    %3 = vector.load %arg2[%c0, %c0_1, %c0_2] : memref<1x8x32xbf16, #tpu.memory_space<vmem>>, vector<1x8x32xbf16>
    %4 = vector.shape_cast %3 : vector<1x8x32xbf16> to vector<8x32xbf16>
    %c0_3 = arith.constant 0 : index
    %c0_4 = arith.constant 0 : index
    %c0_5 = arith.constant 0 : index
    %5 = vector.load %arg5[%c0_3, %c0_4, %c0_5] : memref<1x32x16xbf16, #tpu.memory_space<vmem>>, vector<1x32x16xbf16>
    %6 = vector.shape_cast %5 : vector<1x32x16xbf16> to vector<32x16xbf16>
    %cst = arith.constant dense<0.000000e+00> : vector<8x16xf32>
    %7 = tpu.matmul %4, %6, %cst {dimension_numbers = #tpu.dot_dimension_numbers<[1], [0], [0], [1], [0, 0, 1, 1], [], []>} : vector<8x32xbf16>, vector<32x16xbf16>, vector<8x16xf32> -> vector<8x16xf32>
    %cst_6 = arith.constant 2.500000e-01 : f32
    %8 = vector.broadcast %cst_6 : f32 to vector<8x16xf32>
    %9 = arith.mulf %7, %8 : vector<8x16xf32>
    %c0_7 = arith.constant 0 : index
    %c0_8 = arith.constant 0 : index
    %c0_9 = arith.constant 0 : index
    %10 = vector.load %arg3[%c0_7, %c0_8, %c0_9] : memref<1x24x32xbf16, #tpu.memory_space<vmem>>, vector<1x24x32xbf16>
    %11 = vector.shape_cast %10 : vector<1x24x32xbf16> to vector<24x32xbf16>
    %c0_10 = arith.constant 0 : index
    %c0_11 = arith.constant 0 : index
    %c0_12 = arith.constant 0 : index
    %12 = vector.load %arg6[%c0_10, %c0_11, %c0_12] : memref<1x32x16xbf16, #tpu.memory_space<vmem>>, vector<1x32x16xbf16>
    %13 = vector.shape_cast %12 : vector<1x32x16xbf16> to vector<32x16xbf16>
    %cst_13 = arith.constant dense<0.000000e+00> : vector<24x16xf32>
    %14 = tpu.matmul %11, %13, %cst_13 {dimension_numbers = #tpu.dot_dimension_numbers<[1], [0], [0], [1], [0, 0, 1, 1], [], []>} : vector<24x32xbf16>, vector<32x16xbf16>, vector<24x16xf32> -> vector<24x16xf32>
    %c0_14 = arith.constant 0 : index
    %c0_15 = arith.constant 0 : index
    %c0_16 = arith.constant 0 : index
    %15 = vector.load %arg4[%c0_14, %c0_15, %c0_16] : memref<1x24x32xbf16, #tpu.memory_space<vmem>>, vector<1x24x32xbf16>
    %16 = vector.shape_cast %15 : vector<1x24x32xbf16> to vector<24x32xbf16>
    %c0_17 = arith.constant 0 : index
    %c0_18 = arith.constant 0 : index
    %c0_19 = arith.constant 0 : index
    %17 = vector.load %arg7[%c0_17, %c0_18, %c0_19] : memref<1x32x16xbf16, #tpu.memory_space<vmem>>, vector<1x32x16xbf16>
    %18 = vector.shape_cast %17 : vector<1x32x16xbf16> to vector<32x16xbf16>
    %cst_20 = arith.constant dense<0.000000e+00> : vector<24x16xf32>
    %19 = tpu.matmul %16, %18, %cst_20 {dimension_numbers = #tpu.dot_dimension_numbers<[1], [0], [0], [1], [0, 0, 1, 1], [], []>} : vector<24x32xbf16>, vector<32x16xbf16>, vector<24x16xf32> -> vector<24x16xf32>
    %20 = arith.truncf %9 : vector<8x16xf32> to vector<8x16xbf16>
    %21 = arith.truncf %14 : vector<24x16xf32> to vector<24x16xbf16>
    %22 = arith.truncf %19 : vector<24x16xf32> to vector<24x16xbf16>
    %cst_21 = arith.constant dense<0.000000e+00> : vector<8x24xf32>
    %23 = tpu.matmul %20, %21, %cst_21 {dimension_numbers = #tpu.dot_dimension_numbers<[1], [1], [0], [0], [0, 0, 1, 0], [], []>} : vector<8x16xbf16>, vector<24x16xbf16>, vector<8x24xf32> -> vector<8x24xf32>
    %c0_22 = arith.constant 0 : index
    %c0_23 = arith.constant 0 : index
    %24 = vector.load %arg9[%c0_22, %c0_23] : memref<16x16xbf16, #tpu.memory_space<vmem>>, vector<16x16xbf16>
    %cst_24 = arith.constant dense<0.000000e+00> : vector<8x16xf32>
    %25 = tpu.matmul %20, %24, %cst_24 {dimension_numbers = #tpu.dot_dimension_numbers<[1], [0], [0], [1], [0, 0, 1, 1], [], []>} : vector<8x16xbf16>, vector<16x16xbf16>, vector<8x16xf32> -> vector<8x16xf32>
    %cst_25 = arith.constant -1.000000e+30 : f32
    %26 = vector.broadcast %cst_25 : f32 to vector<8x112xf32>
    %27 = tpu.concatenate %25, %26 in 1 : vector<8x16xf32>, vector<8x112xf32> -> vector<8x128xf32>
    %c0_i32_26 = arith.constant 0 : i32
    %28 = tpu.dynamic_rotate %27 by %c0_i32_26 dim 1 {stride = 1 : si32, stride_dimension = 0 : si32} : vector<8x128xf32>, i32 -> vector<8x128xf32>
    %29 = vector.extract_strided_slice %28 {offsets = [0, 0], sizes = [8, 24], strides = [1, 1]} : vector<8x128xf32> to vector<8x24xf32>
    %30 = arith.addf %23, %29 : vector<8x24xf32>
    %cst_27 = arith.constant dense<0xFF800000> : vector<8xf32>
    %31 = vector.multi_reduction <maximumf>, %30, %cst_27 [1] : vector<8x24xf32> to vector<8xf32>
    %32 = vector.shape_cast %31 : vector<8xf32> to vector<8x1xf32>
    %33 = vector.broadcast %32 : vector<8x1xf32> to vector<8x24xf32>
    %34 = arith.subf %30, %33 : vector<8x24xf32>
    %35 = math.exp %34 : vector<8x24xf32>
    %cst_28 = arith.constant dense<0.000000e+00> : vector<8xf32>
    %36 = vector.multi_reduction <add>, %35, %cst_28 [1] : vector<8x24xf32> to vector<8xf32>
    %37 = vector.shape_cast %36 : vector<8xf32> to vector<8x1xf32>
    %38 = tpu.reciprocal %37 {approx = true} : vector<8x1xf32> -> vector<8x1xf32>
    %39 = vector.broadcast %38 : vector<8x1xf32> to vector<8x24xf32>
    %40 = arith.mulf %35, %39 : vector<8x24xf32>
    %41 = arith.truncf %40 : vector<8x24xf32> to vector<8x24xbf16>
    %cst_29 = arith.constant dense<0.000000e+00> : vector<8x16xf32>
    %42 = tpu.matmul %41, %22, %cst_29 {dimension_numbers = #tpu.dot_dimension_numbers<[1], [0], [0], [1], [0, 0, 1, 1], [], []>} : vector<8x24xbf16>, vector<24x16xbf16>, vector<8x16xf32> -> vector<8x16xf32>
    %c0_30 = arith.constant 0 : index
    %c0_31 = arith.constant 0 : index
    %43 = vector.load %arg11[%c0_30, %c0_31] : memref<8x32xf32, #tpu.memory_space<vmem>>, vector<8x32xf32>
    %44 = arith.truncf %42 : vector<8x16xf32> to vector<8x16xbf16>
    %c0_32 = arith.constant 0 : index
    %c0_33 = arith.constant 0 : index
    %c0_34 = arith.constant 0 : index
    %45 = vector.load %arg8[%c0_32, %c0_33, %c0_34] : memref<1x16x32xbf16, #tpu.memory_space<vmem>>, vector<1x16x32xbf16>
    %46 = vector.shape_cast %45 : vector<1x16x32xbf16> to vector<16x32xbf16>
    %cst_35 = arith.constant dense<0.000000e+00> : vector<8x32xf32>
    %47 = tpu.matmul %44, %46, %cst_35 {dimension_numbers = #tpu.dot_dimension_numbers<[1], [0], [0], [1], [0, 0, 1, 1], [], []>} : vector<8x16xbf16>, vector<16x32xbf16>, vector<8x32xf32> -> vector<8x32xf32>
    %48 = arith.addf %43, %47 : vector<8x32xf32>
    %c0_36 = arith.constant 0 : index
    %c0_37 = arith.constant 0 : index
    %49 = vector.load %arg11[%c0_36, %c0_37] : memref<8x32xf32, #tpu.memory_space<vmem>>, vector<8x32xf32>
    tpu.vector_store %arg11[%c0_36, %c0_37], %48 {strides = array<i32>} : memref<8x32xf32, #tpu.memory_space<vmem>>, vector<8x32xf32>,
    %c1_i32 = arith.constant 1 : i32
    %50 = arith.cmpi eq, %arg1, %c1_i32 : i32
    %51 = arith.extui %50 : i1 to i32
    %c0_i32_38 = arith.constant 0 : i32
    %52 = arith.cmpi ne, %51, %c0_i32_38 : i32
    scf.if %52 {
      %c0_39 = arith.constant 0 : index
      %c0_40 = arith.constant 0 : index
      %53 = vector.load %arg11[%c0_39, %c0_40] : memref<8x32xf32, #tpu.memory_space<vmem>>, vector<8x32xf32>
      %c0_41 = arith.constant 0 : index
      %c0_42 = arith.constant 0 : index
      %c0_43 = arith.constant 0 : index
      %54 = vector.load %arg10[%c0_41, %c0_42, %c0_43] : memref<1x8x32xf32, #tpu.memory_space<vmem>>, vector<1x8x32xf32>
      %55 = vector.shape_cast %54 : vector<1x8x32xf32> to vector<8x32xf32>
      %56 = vector.shape_cast %53 : vector<8x32xf32> to vector<1x8x32xf32>
      tpu.vector_store %arg10[%c0_41, %c0_42, %c0_43], %56 {strides = array<i32>} : memref<1x8x32xf32, #tpu.memory_space<vmem>>, vector<1x8x32xf32>,
    } else {
    }
    return
  }
  func.func @transform_0(%arg0: i32, %arg1: i32) -> (i32, i32, i32) {
    %c0_i32 = arith.constant 0 : i32
    %c0_i32_0 = arith.constant 0 : i32
    %c0_i32_1 = arith.constant 0 : i32
    return %arg0, %c0_i32, %c0_i32_0 : i32, i32, i32
  }
  func.func @transform_1(%arg0: i32, %arg1: i32) -> (i32, i32, i32) {
    %c0_i32 = arith.constant 0 : i32
    %c0_i32_0 = arith.constant 0 : i32
    %c0_i32_1 = arith.constant 0 : i32
    return %arg0, %c0_i32, %c0_i32_0 : i32, i32, i32
  }
  func.func @transform_2(%arg0: i32, %arg1: i32) -> (i32, i32, i32) {
    %c0_i32 = arith.constant 0 : i32
    %c0_i32_0 = arith.constant 0 : i32
    %c0_i32_1 = arith.constant 0 : i32
    return %arg0, %c0_i32, %c0_i32_0 : i32, i32, i32
  }
  func.func @transform_3(%arg0: i32, %arg1: i32) -> (i32, i32, i32) {
    %c0_i32 = arith.constant 0 : i32
    %c0_i32_0 = arith.constant 0 : i32
    %c0_i32_1 = arith.constant 0 : i32
    return %arg1, %c0_i32, %c0_i32_0 : i32, i32, i32
  }
  func.func @transform_4(%arg0: i32, %arg1: i32) -> (i32, i32, i32) {
    %c0_i32 = arith.constant 0 : i32
    %c0_i32_0 = arith.constant 0 : i32
    %c0_i32_1 = arith.constant 0 : i32
    return %arg1, %c0_i32, %c0_i32_0 : i32, i32, i32
  }
  func.func @transform_5(%arg0: i32, %arg1: i32) -> (i32, i32, i32) {
    %c0_i32 = arith.constant 0 : i32
    %c0_i32_0 = arith.constant 0 : i32
    %c0_i32_1 = arith.constant 0 : i32
    return %arg1, %c0_i32, %c0_i32_0 : i32, i32, i32
  }
  func.func @transform_6(%arg0: i32, %arg1: i32) -> (i32, i32, i32) {
    %c0_i32 = arith.constant 0 : i32
    %c0_i32_0 = arith.constant 0 : i32
    %c0_i32_1 = arith.constant 0 : i32
    return %arg1, %c0_i32, %c0_i32_0 : i32, i32, i32
  }
  func.func @transform_7(%arg0: i32, %arg1: i32) -> (i32, i32) {
    %c0_i32 = arith.constant 0 : i32
    %c0_i32_0 = arith.constant 0 : i32
    %c0_i32_1 = arith.constant 0 : i32
    return %c0_i32, %c0_i32_0 : i32, i32
  }
  func.func @transform_8(%arg0: i32, %arg1: i32) -> (i32, i32, i32) {
    %c0_i32 = arith.constant 0 : i32
    %c0_i32_0 = arith.constant 0 : i32
    %c0_i32_1 = arith.constant 0 : i32
    return %arg0, %c0_i32, %c0_i32_0 : i32, i32, i32
  }
}

</mosaic_0001>

<bundles_post_ra>
// kernel: tpu_custom_call.1
= control target key start
LH: loop header
LB: loop body
LE: loop exit
PB: predicated region body
PF: predicated region fallthrough
CT: control target
= control target key end

     0   :  { %s1614_s0 = inlined_call_operand.vmem [shape: bf16[2,8,32], index: 0, kind: input, shape index: {}]   ;;  %s1615_s1 = inlined_call_operand.vmem [shape: bf16[2,24,32], index: 1, kind: input, shape index: {}]   ;;  %s1616_s2 = inlined_call_operand.vmem [shape: bf16[2,24,32], index: 2, kind: input, shape index: {}]   ;;  %s1617_s3 = inlined_call_operand.vmem [shape: bf16[2,32,16], index: 3, kind: input, shape index: {}]   ;;  %s1618_s4 = inlined_call_operand.vmem [shape: bf16[2,32,16], index: 4, kind: input, shape index: {}]   ;;  %s1619_s5 = inlined_call_operand.vmem [shape: bf16[2,32,16], index: 5, kind: input, shape index: {}]   ;;  %s1620_s6 = inlined_call_operand.vmem [shape: bf16[2,16,32], index: 6, kind: input, shape index: {}]   ;;  %s1621_s7 = inlined_call_operand.vmem [shape: bf16[16,16], index: 7, kind: input, shape index: {}]   ;;  %s1622_s8 = inlined_call_operand.hbm [shape: f32[2,8,32], index: 8, kind: output, shape index: {}]  }
   0x1   :  { %1635 = sst [smem:[#allocation16_spill]] %s1614_s0 }
   0x2   :  { %1636 = sst [smem:[#allocation17_spill]] %s1622_s8 }
   0x3   :  { %13 = vsyncpa [#allocation4], 0 }
   0x4   :  { %15 = vsyncpa [#allocation4 + $0x1], 0  ;;  %s1407_s27 = smov 0   ;;  %s1409_s28 = smov 0  }
   0x5   :  { %s1411_s29 = smov 0   ;;  %s1413_s30 = smov 0  }
   0x6   :  { %s1415_s9 = smov 0   ;;  %s1417_s10 = smov 0  }
   0x7   :  { %s1419_s11 = smov 0   ;;  %s1421_s12 = smov 0  }
   0x8 LB: > { %1637 = sst [smem:[#allocation6_spill]] %s1327_s27  ;;  %s1048_s13 = sadd.s32 4294967295, %s1355_s12   ;;  %s1355_s12 = sphi %s1421_s12, %s21_s12   ;;  %s1351_s11 = sphi %s1419_s11, %s1661_s11   ;;  %s1347_s10 = sphi %s1417_s10, %s1660_s10   ;;  %s1343_s9 = sphi %s1415_s9, %s1659_s9   ;;  %s1339_s30 = sphi %s1413_s30, %s1658_s30   ;;  %s1335_s29 = sphi %s1411_s29, %s1657_s29   ;;  %s1331_s28 = sphi %s1409_s28, %s1663_s28   ;;  %s1327_s27 = sphi %s1407_s27, %s1662_s27  }
   0x9   : > { %1638 = sst [smem:[#allocation7_spill]] %s1335_s29  ;;  %s1049_s14 = sadd.s32 4294967294, %s1355_s12  }
   0xa   : > { %1639 = sst [smem:[#allocation8_spill]] %s1347_s10  ;;  %s30_s15 = sadd.s32 1, %s1347_s10 }
   0xb   : > { %1640 = sst [smem:[#allocation9_spill]] %s1351_s11  ;;  %p31_p0 = scmp.ge.s32.totalorder %s30_s15, 2 }
   0xc   : > { %1641 = sst [smem:[#allocation10_spill]] %s1355_s12  ;;  %s33_s16 = sadd.s32 1, %s1351_s11 }
   0xd   : > { %p253_p1 = scmp.ne.s32.totalorder %s1335_s29, %s1331_s28  ;;  %p254_p2 = scmp.eq.s32.totalorder %s1048_s13, 3 }
   0xe   : > { %s1665_s15 = smov (%p31_p0, %s30_s15), 0  ;;  %s1667_s16 = smov (!%p31_p0, %s33_s16), %s1351_s11 }
   0xf   : > { %1642 = sst [smem:[#allocation11_spill]] %s1665_s15  ;;  %p1456_p3 = por %p254_p2, %p253_p1 }
  0x10   : > { %p259_p4 = scmp.ne.s32.totalorder %s1331_s28, %s1327_s27  ;;  %p35_p5 = scmp.ge.s32.totalorder %s1667_s16, 2 }
  0x11   : > { %s1643_s17 = scalar_select %p1456_p3, 1, 0 }
  0x12   : > { %p260_p6 = scmp.eq.s32.totalorder %s1049_s14, 3  ;;  %p1052_p7 = scmp.ge.s32.totalorder %s1355_s12, 1 }
  0x13   : > { %1644 = sst [smem:[#allocation12_spill]] %s1643_s17  ;;  %p336_p8 = scmp.lt.s32.totalorder %s1355_s12, 5 }
  0x14   : > { %s1669_s16 = smov (%p35_p5, %s1667_s16), 0  ;;  %p1466_p9 = por %p260_p6, %p259_p4 }
  0x15   : > { %1645 = sst [smem:[#allocation13_spill]] %s1669_s16  ;;  %p337_p10 = pnand %p1052_p7, %p336_p8 }
  0x16   : > { %s1646_s18 = scalar_select %p1466_p9, 1, 0 }
  0x17   : > { %s240_s19 = ssub.s32 %s1351_s11, %s1669_s16  ;;  %s243_s20 = sadd.s32 1, %s1335_s29 }
  0x18   : > { %1647 = sst [smem:[#allocation14_spill]] %s1646_s18  ;;  %p241_p11 = scmp.eq.s32.totalorder %s240_s19, 0 }
  0x19   : > { %340 = sbr.rel (%p337_p10) target bundleno = 1380 (0x564), region = 52  ;;  %s1627_s22 = sand.u32 (!%p337_p10), 1, %s1331_s28  }
  0x1a   : > { %s1474_s21 = scalar_select %p241_p11, %s1335_s29, %s243_s20  }
  0x1b   : > { %p399_p12 = scmp.lt.s32.totalorder (!%p337_p10), %s1343_s9, 1  ;;  %s1480_s23 = sshll.u32 (!%p337_p10), %s1627_s22, 3 }
  0x1c   : > { %1648 = sst [smem:[#allocation15_spill]] %s1474_s21  ;;  %p413_p13 = scmp.lt.s32.totalorder (!%p337_p10), %s1339_s30, 1 }
  0x1d   : > { %s1649_s0 = sld [smem:[#allocation16_spill]] (!%p337_p10)  ;;  %s398_s21 = scalar_lea.vmem (!%p337_p10), [#allocation3], %s1480_s23 }
  0x1e   : > { %p1065_p0 = scmp.ne.s32.totalorder (!%p337_p10), %s1339_s30, 0 }
  0x20   : > { %s400_s24 = scalar_select %p399_p12, %s1343_s9, 1 }
  0x21   : > { %s414_s25 = scalar_select %p413_p13, %s1339_s30, 1 }
  0x22   : > { %s1054_s26 = sshll.u32 %s400_s24, 2  ;;  %s1169_s13 = smul.u32 12, %s400_s24  ;;  %vm438_vm0 = vcmask (!%p1065_p0), 261120   ;;  %v1357_v0 = vmov (!%p1065_p0), 0.0  }
  0x23   : > { %s402_s20 = scalar_lea.vmem %s1649_s0, %s1054_s26  ;;  %s1092_s16 = sshll.u32 %s414_s25, 4  ;;  %439 = vst.msk [vmem:[#allocation2] sm:$0xff] (!%p1065_p0), %vm438_vm0, %v1357_v0 }
  0x24   : > { %s407_s10 = scalar_lea.vmem %s1615_s1, %s1169_s13  ;;  %s1494_s22 = scalar_lea.vmem %s1616_s2, %s1169_s13 }
  0x25   : > { %s417_s12 = scalar_lea.vmem %s1617_s3, %s1092_s16  ;;  %s422_s17 = scalar_lea.vmem %s1618_s4, %s1092_s16 }
  0x26   : > { %s1505_s19 = scalar_lea.vmem %s1619_s5, %s1092_s16  ;;  %s1095_s11 = sshll.u32 %s414_s25, 3 }
  0x27   : > { %s1510_s29 = scalar_lea.vmem %s1620_s6, %s1095_s11  ;;  %437 = sbr.rel (%p1065_p0) target bundleno = 46 (0x2e), region = 56 }
  0x2e PF: > { %v1245_v1 = vld [vmem:[%s417_s12] sm:$0xff]   ;;  %v1358_v2 = vmov 0.0   ;;  %v1247_v4 = vld [vmem:[%s417_s12 + $0x8] sm:$0xff]   ;;  %vm1359_vm1 = vmmov 0   ;;  %vm457_vm2 = vcmask 261120   ;;  %vm677_vm3 = vcmask 130048  }
  0x2f   : > { %1117 = vmatprep.subr.bf16.mxu0 %v1358_v2  ;;  %v1246_v3 = vld [vmem:[%s422_s17] sm:$0xff]   ;;  %1121 = vmatprep.mubr.msk.bf16.mxu0 %vm1359_vm1, %v1358_v2  ;;  %v1248_v5 = vld [vmem:[%s422_s17 + $0x8] sm:$0xff]   ;;  %vm787_vm4 = vcmask 1043456   ;;  %s1360_s27 = smov 256   ;;  %vm771_vm5 = vcmask 195584   ;;  %p1087_p1 = scmp.ne.s32.totalorder %s1339_s30, 1 }
  0x30   : > { %1118 = vmatpush3.bf16.msra.mxu0 %v1245_v1  ;;  %1125 = vmatprep.subr.bf16.mxu1 %v1246_v3  ;;  %v440_v6 = vld [vmem:[%s402_s20] sm:$0xf]  ;;  %v1250_v8 = vld [vmem:[%s407_s10 + $0x8] ss:$0 sps:$4 sm:$0xff]  }
  0x31   : > { %1119 = vmatprep.subr.bf16.mxu0 %v1358_v2  ;;  %1126 = vmatpush3.bf16.msra.mxu1 %v1246_v3  ;;  %v1249_v7 = vld [vmem:[%s407_s10] sm:$0xff]   ;;  %v1253_v11 = vld [vmem:[%s1505_s19 + $0x8] sm:$0xff]  }
  0x32   : > { %1127 = vmatprep.subr.bf16.mxu1 %v1248_v5  ;;  %v1251_v9 = vld [vmem:[%s1505_s19] sm:$0xff]   ;;  %1129 = vmatprep.mubr.msk.bf16.mxu1 %vm457_vm2, %v1249_v7  ;;  %v1255_v13 = vld [vmem:[%s1494_s22 + $0x8] ss:$0 sps:$4 sm:$0xff]  }
  0x33   : > { %v1252_v10 = vld [vmem:[%s1621_s7] sm:$0xff]  }
  0x34   : > { %1120 = vmatpush3.bf16.msra.mxu0 %v1247_v4  ;;  %v1254_v12 = vld [vmem:[%s1494_s22] sm:$0xff]  }
  0x35   : > { %1128 = vmatpush3.bf16.msra.mxu1 %v1248_v5  ;;  %1133 = vmatprep.subr.bf16.mxu0 %v1251_v9  ;;  %v1256_v55 = vld [vmem:[%s1510_s29] sm:$0xff]  }
  0x36   : > { %1141 = vmatprep.subr.bf16.mxu1 %v1358_v2  ;;  %v831_v62 = vld [vmem:[#allocation2] sm:$0xff] }
  0x37   : > { %1122 = vmatmul.mubr.msk.bf16.vlgmr.msra.gmra.mrb[0].mxu0 %vm457_vm2, %v440_v6 }
  0x38   : > { %1134 = vmatpush3.bf16.msra.mxu0 %v1251_v9  ;;  %1130 = vmatmul.mubr.msk.bf16.vlgmr.msra.gmra.mrb[0].mxu1 %vm457_vm2, %v1250_v8 }
  0x39   : > { %1135 = vmatprep.subr.bf16.mxu0 %v1253_v11  ;;  %1142 = vmatpush3.bf16.msra.mxu1 %v1252_v10 }
  0x3a   : > { %1143 = vmatprep.mubr.msk.bf16.mxu1 %vm1359_vm1, %v1358_v2  ;;  %1155 = vmatprep.subr.bf16.mxu1 %v1358_v2 }
  0x3b   : > { %1137 = vmatprep.mubr.msk.bf16.mxu0 %vm457_vm2, %v1254_v12 }
  0x3c   : > { %1136 = vmatpush3.bf16.msra.mxu0 %v1253_v11 }
  0x3d   : > { %1147 = vmatprep.subr.bf16.mxu0 %v1358_v2 }
  0x3f   : > { %1138 = vmatmul.mubr.msk.bf16.vlgmr.msra.gmra.mrb[4].mxu0 %vm457_vm2, %v1255_v13 }
  0x40   : > { %1151 = vmatprep.mubr.msk.bf16.mxu0 %vm1359_vm1, %v1358_v2 }
 0x10a   : > { %v495_v14 = vpop.f32.mrb[0].mxu0 }
 0x10b   : > { %v501_v15 = vmul.f32 0.25, %v495_v14  ;;  %v1123_v16 = vpop.f32.mrb[1].mxu0  ;;  %v1131_v17 = vpop.f32.mrb[0].mxu1 }
 0x10c   : > { %v498_v18 = vpop.f32.mrb[2].mxu0  ;;  %v569_v20 = vpop.f32.mrb[1].mxu1  ;;  %v666_v26 = vpack.c.bf16 %v1131_v17, %v1131_v17 }
 0x10d   : > { %v664_v19 = vpack.c.bf16 %v501_v15, %v501_v15  ;;  %v1124_v21 = vpop.f32.mrb[3].mxu0  ;;  %v1132_v22 = vpop.f32.mrb[2].mxu1 }
 0x10e   : > { %v572_v23 = vpop.f32.mrb[3].mxu1  ;;  %v729_v27 = vsel %vm677_vm3, %v666_v26, 0 }
 0x10f   : > { %1144 = vmatmul.mubr.msk.bf16.vlgmr.msra.gmra.mrb[4].mxu1 %vm677_vm3, %v664_v19  ;;  %v665_v24 = vpack.c.bf16 %v572_v23, %v569_v20 }
 0x110   : > { %1159 = vmatprep.mubr.msk.bf16.mxu1 %vm1359_vm1, %v1358_v2 }
 0x111   : > { %v726_v25 = vsel %vm677_vm3, %v665_v24, 0 }
 0x112   : > { %1148 = vmatpush3.bf16.xpose.msra.mxu0 %v726_v25  ;;  %v1139_v28 = vpop.f32.mrb[4].mxu0 }
 0x113   : > { %1149 = vmatprep.subr.bf16.mxu0 %v1358_v2  ;;  %v650_v29 = vpop.f32.mrb[5].mxu0  ;;  %v668_v31 = vpack.c.bf16 %v1139_v28, %v1139_v28 }
 0x114   : > { %v1140_v30 = vpop.f32.mrb[6].mxu0 }
 0x115   : > { %v653_v32 = vpop.f32.mrb[7].mxu0  ;;  %v789_v34 = vsel %vm787_vm4, %v668_v31, 0 }
 0x116   : > { %v667_v33 = vpack.c.bf16 %v653_v32, %v650_v29 }
 0x118   : > { %1156 = vmatpush3.bf16.msra.mxu1 %v667_v33 }
 0x119   : > { %1157 = vmatprep.subr.bf16.mxu1 %v1358_v2 }
 0x11a   : > { %1150 = vmatpush3.bf16.xpose.msra.mxu0 %v729_v27 }
 0x11c   : > { %1158 = vmatpush3.bf16.msra.mxu1 %v789_v34 }
 0x11d   : > { %1163 = vmatprep.subr.bf16.mxu1 %v1358_v2 }
 0x121   : > { %1152 = vmatmul.mubr.msk.bf16.vlgmr.msra.gmra.mrb[8].mxu0 %vm677_vm3, %v664_v19 }
 0x1e2   : > { %v715_v35 = vpop.f32.mrb[4].mxu1 }
 0x1e3   : > { %v1145_v36 = vpop.f32.mrb[5].mxu1  ;;  %v721_v37 = vsel %vm677_vm3, %v715_v35, -1e+30 }
 0x1e4   : > { %723 = vrot.lane.b32.xlu0 %v721_v37, %s1360_s27  ;;  %v718_v38 = vpop.f32.mrb[6].mxu1 }
 0x1e5   : > { %v1146_v39 = vpop.f32.mrb[7].mxu1 }
 0x1f4   : > { %v765_v40 = vpop.f32.mrb[8].mxu0 }
 0x1f5   : > { %v1153_v41 = vpop.f32.mrb[9].mxu0 }
 0x1f6   : > { %v768_v42 = vpop.f32.mrb[10].mxu0 }
 0x1f7   : > { %v1154_v43 = vpop.f32.mrb[11].mxu0 }
 0x256   : > { %v724_v44 = vpop.permute.xlu0 %723 }
 0x257   : > { %v766_v45 = vadd.f32 %v765_v40, %v724_v44 }
 0x259   : > { %v772_v46 = vsel %vm771_vm5, %v766_v45, -inf }
 0x25a   : > { %773 = vmax.xlane.f32.xlu0 %v772_v46 }
 0x2e7   : > { %v774_v47 = vpop.xlane.xlu0 %773 }
 0x2e8   : > { %v775_v48 = vsub.f32 %v766_v45, %v774_v47 }
 0x2ea   : > { %v776_v49 = vmul.f32 1.442695, %v775_v48 }
 0x2ec   : > { %1257 = vpow2.f32 %v776_v49 }
 0x2f6   : > { %v1258_v50 = vpop.eup %1257 }
 0x2f7   : > { %v778_v51 = vsel %vm771_vm5, %v1258_v50, 0.0 }
 0x2f8   : > { %779 = vadd.xlane.f32.xlu1 %v778_v51 }
 0x385   : > { %v780_v52 = vpop.xlane.xlu1 %779 }
 0x386   : > { %1259 = vrcp.f32 %v780_v52 }
 0x390   : > { %v1260_v53 = vpop.eup %1259 }
 0x391   : > { %v782_v54 = vmul.f32 %v1260_v53, %v1258_v50 }
 0x393   : > { %v783_v56 = vpack.c.bf16 %v782_v54, %v782_v54 }
 0x395   : > { %1160 = vmatmul.mubr.msk.bf16.vlgmr.msra.gmra.mrb[8].mxu1 %vm771_vm5, %v783_v56 }
 0x396   : > { %1164 = vmatpush3.bf16.msra.mxu1 %v1256_v55  ;;  %1165 = vmatprep.mubr.msk.bf16.mxu1 %vm1359_vm1, %v1358_v2 }
 0x468   : > { %v825_v57 = vpop.f32.mrb[8].mxu1 }
 0x469   : > { %v832_v58 = vpack.c.bf16 %v825_v57, %v825_v57  ;;  %v1161_v59 = vpop.f32.mrb[9].mxu1 }
 0x46a   : > { %v828_v60 = vpop.f32.mrb[10].mxu1 }
 0x46b   : > { %v1162_v61 = vpop.f32.mrb[11].mxu1  ;;  %1166 = vmatmul.mubr.msk.bf16.vlgmr.msra.gmra.mrb[12].mxu1 %vm677_vm3, %v832_v58 }
 0x53b   : > { %889 = sbr.rel (%p1087_p1) target bundleno = 1354 (0x54a), region = 60 }
 0x53e   : > { %v878_v63 = vpop.f32.mrb[12].mxu1 }
 0x53f   : > { %v884_v0 = vadd.f32 %v878_v63, %v831_v62  ;;  %v1167_v1 = vpop.f32.mrb[13].mxu1 }
 0x540   : > { %v881_v3 = vpop.f32.mrb[14].mxu1 }
 0x541   : > { %885 = vst.msk [vmem:[#allocation2] sm:$0xff] %vm457_vm2, %v884_v0  ;;  %v1168_v4 = vpop.f32.mrb[15].mxu1 }
 0x548   : > { %v890_v5 = vld [vmem:[#allocation2] sm:$0xff] }
 0x549   : > { %891 = vst.msk [vmem:[%s398_s21] sm:$0xff] %vm457_vm2, %v890_v5 }
 0x54a PF: > { %s1089_s12 = sshll.u32 %s1343_s9, 7  ;;  %s1651_s18 = sld [smem:[#allocation17_spill]] }
 0x54b   : > { %s906_s25 = sshll.u32 %s398_s21, 4  ;;  %s1652_s30 = sand.u32 1, %s1331_s28   ;;  %s907_s25 = int_to_ptr.vmem [resolvable:$true] %s906_s25 }
 0x54c   : > { %s893_s13 = scalar_lea.sflag [#allocation4], %s1652_s30  ;;  %s1261_s20 = scalar_lea.vmem %s907_s25, 128 }
 0x54d   : > { %p1262_p2 = scmp.ne.s32.totalorder %s907_s25, %s1261_s20  ;;  %s1361_s24 = smov [#allocation3]  }
 0x54e   : > { %s1265_s14 = sshll.u32 %s1361_s24, 4  ;;  %s1266_s14 = int_to_ptr.vmem [resolvable:$false] %s1265_s14 }
 0x54f   : > { %p1263_p4 = pnand %p1262_p2, %p1456_p3  ;;  %s1267_s26 = scalar_lea.vmem %s1266_s14, 256 }
 0x550   : > { %s1563_s22 = scalar_lea.hbm %s1651_s18, %s1089_s12  ;;  %p1268_p6 = scmp.lt.s32.totalorder %s907_s25, %s1266_s14 }
 0x551   : > { %p1264_p5 = pneg %p1263_p4  ;;  %p1269_p7 = scmp.lt.s32.totalorder %s1267_s26, %s1261_s20 }
 0x553   : > { %p1270_p8 = por %p1269_p7, %p1268_p6 }
 0x555   : > { %p1271_p10 = pnand %p1270_p8, %p1264_p5 }
 0x557   : > { %1274 = shalt.err (!%p1271_p10)
}
 0x558   : > { %s1275_s9 = scalar_lea.hbm %s1563_s22, 128  ;;  %s1279_s11 = scalar_lea.hbm %s1651_s18, 256 }
 0x559   : > { %p1276_p11 = scmp.ne.s32.totalorder %s1563_s22, %s1275_s9  ;;  %p1280_p0 = scmp.lt.u32.totalorder %s1563_s22, %s1651_s18 }
 0x55a   : > { %p1281_p1 = scmp.lt.u32.totalorder %s1279_s11, %s1275_s9  ;;  %p1283_p4 = scmp.lt.u32.totalorder %s1275_s9, %s1563_s22 }
 0x55b   : > { %p1277_p12 = pnand %p1276_p11, %p1456_p3 }
 0x55c   : > { %p1282_p2 = por %p1281_p1, %p1280_p0 }
 0x55d   : > { %p1278_p13 = pneg %p1277_p12 }
 0x55e   : > { %p1284_p5 = por %p1283_p4, %p1282_p2 }
 0x560   : > { %p1285_p6 = pnand %p1284_p5, %p1278_p13 }
 0x562   : > { %1288 = shalt.err (!%p1285_p6)
}
 0x563   : > { %1170 = dma.vmem_to_hbm [thread:$0]  (%p1456_p3), %s907_s25, 128, %s1563_s22, %s893_s13  }
 0x564 PF: > { %s1653_s21 = sld [smem:[#allocation10_spill]]  ;;  %s1654_s0 = sld [smem:[#allocation6_spill]] }
 0x56a   : > { %p1176_p7 = scmp.ge.s32.totalorder %s1653_s21, 2  ;;  %s918_s27 = sand.u32 1, %s1654_s0  }
 0x56b   : > { %s919_s12 = scalar_lea.sflag [#allocation4], %s918_s27 }
 0x56c   : > { %p1173_p8 = pnand %p1176_p7, %p1466_p9 }
 0x56e   : > { %1322 = dma.done.wait (!%p1173_p8), %s919_s12, 128  }
 0x56f   : > { %1324 = vsyncadd (!%p1173_p8), %s919_s12, 4294967168  ;;  %s21_s12 = sadd.s32 1, %s1653_s21   ;;  %s1656_s16 = sld [smem:[#allocation7_spill]] }
 0x570   : > { %p18_p10 = scmp.ge.s32.totalorder %s21_s12, 6   ;;  %s1657_s29 = sld [smem:[#allocation15_spill]] }
 0x571   : > { %s1658_s30 = sld [smem:[#allocation8_spill]]  ;;  %s1659_s9 = sld [smem:[#allocation9_spill]] }
 0x572   : > { %s1660_s10 = sld [smem:[#allocation11_spill]]  ;;  %s1661_s11 = sld [smem:[#allocation13_spill]] }
 0x573   : > { %s1662_s27 = smov %s1331_s28  ;;  %20 = sbr.rel (!%p18_p10) target bundleno = 8 (0x8), region = 113 }
 0x575   : > { %s1663_s28 = smov %s1656_s16 }
 0x57a   :  { %924 = vsyncpa [#allocation4], 1 }
 0x57b   :  { %926 = vsyncpa [#allocation4 + $0x1], 1 }

</bundles_post_ra>
